<compile_context>
chip_gen: v7x
topology: tpu7x:2x2x1
jax: 0.10.0
libtpu: 0.0.40
codegen_flags: <defaults>
</compile_context>

<pallas_src>
import jax
import jax.numpy as jnp
from jax.experimental import pallas as pl
from jax.experimental.pallas import tpu as pltpu


def _round_up(x: int, m: int) -> int:
    return ((x + m - 1) // m) * m


# ---------------------------------------------------------------------------
# Path 1: VMEM-resident tables, on-chip (one-hot / MXU) gather.
# ---------------------------------------------------------------------------
def _glove_resident_kernel(idx_i_ref, idx_j_ref, bsum_ref, wiT_ref, wjT_ref,
                           out_ref):
    # idx_i_ref / idx_j_ref : (rows, 128) int32   lane-dense index tiles
    # bsum_ref              : (rows, 128) f32     bi[i] + bj[j], lane-dense
    # wiT_ref / wjT_ref     : (D_pad, V_pad) f32  transposed tables, resident
    # out_ref               : (rows, 128) f32     lane-dense output tile
    rows = out_ref.shape[0]
    v_pad = wiT_ref.shape[1]

    wi_t = wiT_ref[...]                                    # (D_pad, V_pad)
    wj_t = wjT_ref[...]
    vocab = jax.lax.broadcasted_iota(jnp.int32, (v_pad, 128), 0)

    # Static unroll over `rows` groups of 128 batch elements; batch stays on
    # lanes for the whole computation, so no transposes / reshapes are needed.
    for g in range(rows):
        ii = idx_i_ref[pl.ds(g, 1), :]                     # (1, 128) int32
        jj = idx_j_ref[pl.ds(g, 1), :]
        oh_i = jnp.where(vocab == ii, 1.0, 0.0).astype(jnp.float32)  # (V_pad,128)
        oh_j = jnp.where(vocab == jj, 1.0, 0.0).astype(jnp.float32)
        # Row gather via MXU: (D_pad, V_pad) @ (V_pad, 128) -> (D_pad, 128).
        w_i = jnp.dot(wi_t, oh_i, preferred_element_type=jnp.float32)
        w_j = jnp.dot(wj_t, oh_j, preferred_element_type=jnp.float32)
        # Dot over D: elementwise multiply (VPU) + sublane reduce (XLU).
        s = jnp.sum(w_i * w_j, axis=0, keepdims=True)      # (1, 128)
        out_ref[pl.ds(g, 1), :] = s + bsum_ref[pl.ds(g, 1), :]


# ---------------------------------------------------------------------------
# Path 2: streamed gather slabs (large vocab).
# ---------------------------------------------------------------------------
def _glove_slab_kernel(wi_ref, wj_ref, bsum_ref, out_ref):
    # wi_ref / wj_ref : (tb, D_pad)  gathered embedding slabs (f32 or bf16)
    # bsum_ref        : (1, tb) f32  fused bias tile (lane-dense)
    # out_ref         : (1, tb) f32  lane-dense output tile
    prod = wi_ref[...].astype(jnp.float32) * wj_ref[...].astype(jnp.float32)
    s = jnp.sum(prod, axis=-1)                             # (tb,) lane reduce
    out_ref[...] = s[None, :] + bsum_ref[...]


def glove_forward(i_indices, j_indices, wi, wj, bi, bj, *,
                  tb=2048, resident_max_vocab=512, use_bf16_slabs=True):
    """Pallas implementation of GloveModel.forward.

    i_indices, j_indices : (B,) integer
    wi, wj               : (V, D) float32 embedding tables
    bi, bj               : (V, 1) float32 bias tables
    returns              : (B,) float32
    """
    B = int(i_indices.shape[0])
    V, D = wi.shape
    D_pad = _round_up(D, 128)

    ii = i_indices.astype(jnp.int32)
    jj = j_indices.astype(jnp.int32)

    # Tile selection: large tiles amortise the ~0.35 us per-step cost, but
    # prefer >= 2 grid steps when B allows so both v7x TensorCores get work.
    tb = max(128, min(_round_up(tb, 128), _round_up(pl.cdiv(B, 2), 128)))

    resident_ok = (V <= resident_max_vocab
                   and 2 * 2 * D_pad * _round_up(V, 128) * 4 <= (8 << 20))

    slab_dtype = jnp.bfloat16 if (use_bf16_slabs and not resident_ok) else jnp.float32
    if not resident_ok:
        # Keep 2 slabs x 2 pipeline buffers under ~12 MiB (v5e scoped default
        # is 16 MiB; v6e/v7x have more headroom).
        itemsize = jnp.dtype(slab_dtype).itemsize
        tb_cap = ((12 << 20) // (4 * D_pad * itemsize)) // 128 * 128
        tb = max(128, min(tb, tb_cap))

    num_tiles = pl.cdiv(B, tb)
    B_pad = num_tiles * tb
    pad = B_pad - B
    rows = tb // 128

    # Padded batch elements use index 0 (valid row); results are sliced off.
    ii = jnp.pad(ii, (0, pad))
    jj = jnp.pad(jj, (0, pad))

    # Fused bias: one small stream instead of two.
    b_sum = jnp.take(bi[:, 0], ii, axis=0) + jnp.take(bj[:, 0], jj, axis=0)

    if resident_ok:
        V_pad = _round_up(V, 128)
        wiT = jnp.pad(wi, ((0, V_pad - V), (0, D_pad - D))).T   # (D_pad, V_pad)
        wjT = jnp.pad(wj, ((0, V_pad - V), (0, D_pad - D))).T

        idx_i3 = ii.reshape(num_tiles, rows, 128)
        idx_j3 = jj.reshape(num_tiles, rows, 128)
        bsum3 = b_sum.reshape(num_tiles, rows, 128)

        lane_spec = pl.BlockSpec((None, rows, 128), lambda t: (t, 0, 0))
        table_spec = pl.BlockSpec((D_pad, V_pad), lambda t: (0, 0))

        cost = pl.CostEstimate(
            flops=4 * B_pad * V_pad * D_pad + 2 * B_pad * D_pad,
            transcendentals=0,
            bytes_accessed=2 * D_pad * V_pad * 4 + 4 * B_pad * 4,
        )

        out = pl.pallas_call(
            _glove_resident_kernel,
            out_shape=jax.ShapeDtypeStruct((num_tiles, rows, 128), jnp.float32),
            grid=(num_tiles,),
            in_specs=[lane_spec, lane_spec, lane_spec, table_spec, table_spec],
            out_specs=pl.BlockSpec((None, rows, 128), lambda t: (t, 0, 0)),
            compiler_params=pltpu.CompilerParams(
                dimension_semantics=("parallel",)),
            cost_estimate=cost,
        )(idx_i3, idx_j3, bsum3, wiT, wjT)
    else:
        wi_p = jnp.pad(wi, ((0, 0), (0, D_pad - D)))
        wj_p = jnp.pad(wj, ((0, 0), (0, D_pad - D)))
        w_i = jnp.take(wi_p, ii, axis=0).astype(slab_dtype)     # (B_pad, D_pad)
        w_j = jnp.take(wj_p, jj, axis=0).astype(slab_dtype)
        bsum3 = b_sum.reshape(num_tiles, 1, tb)

        itemsize = jnp.dtype(slab_dtype).itemsize
        cost = pl.CostEstimate(
            flops=2 * B_pad * D_pad,
            transcendentals=0,
            bytes_accessed=2 * B_pad * D_pad * itemsize + 2 * B_pad * 4,
        )

        out = pl.pallas_call(
            _glove_slab_kernel,
            out_shape=jax.ShapeDtypeStruct((num_tiles, 1, tb), jnp.float32),
            grid=(num_tiles,),
            in_specs=[
                pl.BlockSpec((tb, D_pad), lambda t: (t, 0)),
                pl.BlockSpec((tb, D_pad), lambda t: (t, 0)),
                pl.BlockSpec((None, 1, tb), lambda t: (t, 0, 0)),
            ],
            out_specs=pl.BlockSpec((None, 1, tb), lambda t: (t, 0, 0)),
            compiler_params=pltpu.CompilerParams(
                dimension_semantics=("parallel",)),
            cost_estimate=cost,
        )(w_i, w_j, bsum3)

    # torch's .squeeze(): (B,) result.
    return out.reshape(B_pad)[:B]


def glove_reference(i_indices, j_indices, wi, wj, bi, bj):
    """Pure-JAX reference mirroring the PyTorch forward."""
    w_i = wi[i_indices]                 # (B, D)
    w_j = wj[j_indices]                 # (B, D)
    b_i = bi[i_indices][:, 0]           # (B,)
    b_j = bj[j_indices][:, 0]           # (B,)
    return jnp.sum(w_i * w_j, axis=1) + b_i + b_j


if __name__ == "__main__":
    # Small synthetic shapes consistent with the module:
    #   vocab V = 64, embedding_dim D = 128, batch B = 300.
    V, D, B = 64, 128, 300

    key = jax.random.PRNGKey(0)
    k_wi, k_wj, k_bi, k_bj, k_i, k_j = jax.random.split(key, 6)

    # wi, wj ~ U(-1, 1) as in the module; small nonzero biases so the bias
    # path is actually exercised (module init zeroes them, forward is generic).
    wi = jax.random.uniform(k_wi, (V, D), jnp.float32, minval=-1.0, maxval=1.0)
    wj = jax.random.uniform(k_wj, (V, D), jnp.float32, minval=-1.0, maxval=1.0)
    bi = jax.random.uniform(k_bi, (V, 1), jnp.float32, minval=-0.1, maxval=0.1)
    bj = jax.random.uniform(k_bj, (V, 1), jnp.float32, minval=-0.1, maxval=0.1)

    i_indices = jax.random.randint(k_i, (B,), 0, V, dtype=jnp.int32)
    j_indices = jax.random.randint(k_j, (B,), 0, V, dtype=jnp.int32)

    ref = glove_reference(i_indices, j_indices, wi, wj, bi, bj)

    # Path 1: VMEM-resident tables (default for this vocab size).
    out_res = jax.block_until_ready(
        glove_forward(i_indices, j_indices, wi, wj, bi, bj))
    assert out_res.shape == (B,)
    assert jnp.allclose(out_res, ref, atol=1e-4, rtol=1e-4)

    # Path 2: streamed f32 gather slabs (force residency off to exercise it).
    out_slab = jax.block_until_ready(
        glove_forward(i_indices, j_indices, wi, wj, bi, bj,
                      resident_max_vocab=0, use_bf16_slabs=False))
    assert jnp.allclose(out_slab, ref, atol=1e-4, rtol=1e-4)

    # Path 2 with bf16 slabs (halves the dominant HBM stream; looser tol).
    out_bf16 = jax.block_until_ready(
        glove_forward(i_indices, j_indices, wi, wj, bi, bj,
                      resident_max_vocab=0, use_bf16_slabs=True))
    assert jnp.allclose(out_bf16, ref, atol=1e-1, rtol=1e-2)

    print("KERNEL_OK")
</pallas_src>

<mosaic_0001>
module attributes {stable_mosaic.version = 11 : i64} {
  func.func @_glove_resident_kernel(%arg0: i32, %arg1: memref<1x2x128xi32, #tpu.memory_space<vmem>>, %arg2: memref<1x2x128xi32, #tpu.memory_space<vmem>>, %arg3: memref<1x2x128xf32, #tpu.memory_space<vmem>>, %arg4: memref<128x128xf32, #tpu.memory_space<vmem>>, %arg5: memref<128x128xf32, #tpu.memory_space<vmem>>, %arg6: memref<1x2x128xf32, #tpu.memory_space<vmem>>) attributes {dimension_semantics = [#tpu.dimension_semantics<parallel>], iteration_bounds = array<i64: 2>, scalar_prefetch = 0 : i64, scratch_operands = 0 : i64, tpu.core_type = #tpu.core_type<tc>, window_params = [{transform_indices = @transform_0, window_bounds = array<i64: 1, 2, 128>}, {transform_indices = @transform_1, window_bounds = array<i64: 1, 2, 128>}, {transform_indices = @transform_2, window_bounds = array<i64: 1, 2, 128>}, {pipeline_mode = #tpu.pipeline_mode<synchronous>, transform_indices = @transform_3, window_bounds = array<i64: 128, 128>}, {pipeline_mode = #tpu.pipeline_mode<synchronous>, transform_indices = @transform_4, window_bounds = array<i64: 128, 128>}, {transform_indices = @transform_5, window_bounds = array<i64: 1, 2, 128>}]} {
    %c0 = arith.constant 0 : index
    %c0_0 = arith.constant 0 : index
    %0 = vector.load %arg4[%c0, %c0_0] : memref<128x128xf32, #tpu.memory_space<vmem>>, vector<128x128xf32>
    %c0_1 = arith.constant 0 : index
    %c0_2 = arith.constant 0 : index
    %1 = vector.load %arg5[%c0_1, %c0_2] : memref<128x128xf32, #tpu.memory_space<vmem>>, vector<128x128xf32>
    %2 = tpu.iota {dimensions = array<i32: 0>} : vector<128x128xi32>
    %c0_3 = arith.constant 0 : index
    %c0_4 = arith.constant 0 : index
    %c0_5 = arith.constant 0 : index
    %3 = vector.load %arg1[%c0_3, %c0_4, %c0_5] : memref<1x2x128xi32, #tpu.memory_space<vmem>>, vector<1x1x128xi32>
    %4 = vector.shape_cast %3 : vector<1x1x128xi32> to vector<1x128xi32>
    %c0_6 = arith.constant 0 : index
    %c0_7 = arith.constant 0 : index
    %c0_8 = arith.constant 0 : index
    %5 = vector.load %arg2[%c0_6, %c0_7, %c0_8] : memref<1x2x128xi32, #tpu.memory_space<vmem>>, vector<1x1x128xi32>
    %6 = vector.shape_cast %5 : vector<1x1x128xi32> to vector<1x128xi32>
    %7 = vector.broadcast %4 : vector<1x128xi32> to vector<128x128xi32>
    %8 = arith.cmpi eq, %2, %7 : vector<128x128xi32>
    %cst = arith.constant 1.000000e+00 : f32
    %cst_9 = arith.constant 0.000000e+00 : f32
    %9 = vector.broadcast %cst : f32 to vector<128x128xf32>
    %10 = vector.broadcast %cst_9 : f32 to vector<128x128xf32>
    %11 = arith.select %8, %9, %10 : vector<128x128xi1>, vector<128x128xf32>
    %12 = vector.broadcast %6 : vector<1x128xi32> to vector<128x128xi32>
    %13 = arith.cmpi eq, %2, %12 : vector<128x128xi32>
    %cst_10 = arith.constant 1.000000e+00 : f32
    %cst_11 = arith.constant 0.000000e+00 : f32
    %14 = vector.broadcast %cst_10 : f32 to vector<128x128xf32>
    %15 = vector.broadcast %cst_11 : f32 to vector<128x128xf32>
    %16 = arith.select %13, %14, %15 : vector<128x128xi1>, vector<128x128xf32>
    %cst_12 = arith.constant dense<0.000000e+00> : vector<128x128xf32>
    %17 = tpu.matmul %0, %11, %cst_12 {dimension_numbers = #tpu.dot_dimension_numbers<[1], [0], [0], [1], [0, 0, 1, 1], [], []>} : vector<128x128xf32>, vector<128x128xf32>, vector<128x128xf32> -> vector<128x128xf32>
    %cst_13 = arith.constant dense<0.000000e+00> : vector<128x128xf32>
    %18 = tpu.matmul %1, %16, %cst_13 {dimension_numbers = #tpu.dot_dimension_numbers<[1], [0], [0], [1], [0, 0, 1, 1], [], []>} : vector<128x128xf32>, vector<128x128xf32>, vector<128x128xf32> -> vector<128x128xf32>
    %19 = arith.mulf %17, %18 : vector<128x128xf32>
    %cst_14 = arith.constant dense<0.000000e+00> : vector<128xf32>
    %20 = vector.multi_reduction <add>, %19, %cst_14 [0] : vector<128x128xf32> to vector<128xf32>
    %21 = vector.shape_cast %20 : vector<128xf32> to vector<1x128xf32>
    %c0_15 = arith.constant 0 : index
    %c0_16 = arith.constant 0 : index
    %c0_17 = arith.constant 0 : index
    %22 = vector.load %arg3[%c0_15, %c0_16, %c0_17] : memref<1x2x128xf32, #tpu.memory_space<vmem>>, vector<1x1x128xf32>
    %23 = vector.shape_cast %22 : vector<1x1x128xf32> to vector<1x128xf32>
    %24 = arith.addf %21, %23 : vector<1x128xf32>
    %c0_18 = arith.constant 0 : index
    %c0_19 = arith.constant 0 : index
    %c0_20 = arith.constant 0 : index
    %25 = vector.load %arg6[%c0_18, %c0_19, %c0_20] : memref<1x2x128xf32, #tpu.memory_space<vmem>>, vector<1x1x128xf32>
    %26 = vector.shape_cast %25 : vector<1x1x128xf32> to vector<1x128xf32>
    %27 = vector.shape_cast %24 : vector<1x128xf32> to vector<1x1x128xf32>
    tpu.vector_store %arg6[%c0_18, %c0_19, %c0_20], %27 {strides = array<i32>} : memref<1x2x128xf32, #tpu.memory_space<vmem>>, vector<1x1x128xf32>,
    %c0_21 = arith.constant 0 : index
    %c1 = arith.constant 1 : index
    %c0_22 = arith.constant 0 : index
    %28 = vector.load %arg1[%c0_21, %c1, %c0_22] : memref<1x2x128xi32, #tpu.memory_space<vmem>>, vector<1x1x128xi32>
    %29 = vector.shape_cast %28 : vector<1x1x128xi32> to vector<1x128xi32>
    %c0_23 = arith.constant 0 : index
    %c1_24 = arith.constant 1 : index
    %c0_25 = arith.constant 0 : index
    %30 = vector.load %arg2[%c0_23, %c1_24, %c0_25] : memref<1x2x128xi32, #tpu.memory_space<vmem>>, vector<1x1x128xi32>
    %31 = vector.shape_cast %30 : vector<1x1x128xi32> to vector<1x128xi32>
    %32 = vector.broadcast %29 : vector<1x128xi32> to vector<128x128xi32>
    %33 = arith.cmpi eq, %2, %32 : vector<128x128xi32>
    %cst_26 = arith.constant 1.000000e+00 : f32
    %cst_27 = arith.constant 0.000000e+00 : f32
    %34 = vector.broadcast %cst_26 : f32 to vector<128x128xf32>
    %35 = vector.broadcast %cst_27 : f32 to vector<128x128xf32>
    %36 = arith.select %33, %34, %35 : vector<128x128xi1>, vector<128x128xf32>
    %37 = vector.broadcast %31 : vector<1x128xi32> to vector<128x128xi32>
    %38 = arith.cmpi eq, %2, %37 : vector<128x128xi32>
    %cst_28 = arith.constant 1.000000e+00 : f32
    %cst_29 = arith.constant 0.000000e+00 : f32
    %39 = vector.broadcast %cst_28 : f32 to vector<128x128xf32>
    %40 = vector.broadcast %cst_29 : f32 to vector<128x128xf32>
    %41 = arith.select %38, %39, %40 : vector<128x128xi1>, vector<128x128xf32>
    %cst_30 = arith.constant dense<0.000000e+00> : vector<128x128xf32>
    %42 = tpu.matmul %0, %36, %cst_30 {dimension_numbers = #tpu.dot_dimension_numbers<[1], [0], [0], [1], [0, 0, 1, 1], [], []>} : vector<128x128xf32>, vector<128x128xf32>, vector<128x128xf32> -> vector<128x128xf32>
    %cst_31 = arith.constant dense<0.000000e+00> : vector<128x128xf32>
    %43 = tpu.matmul %1, %41, %cst_31 {dimension_numbers = #tpu.dot_dimension_numbers<[1], [0], [0], [1], [0, 0, 1, 1], [], []>} : vector<128x128xf32>, vector<128x128xf32>, vector<128x128xf32> -> vector<128x128xf32>
    %44 = arith.mulf %42, %43 : vector<128x128xf32>
    %cst_32 = arith.constant dense<0.000000e+00> : vector<128xf32>
    %45 = vector.multi_reduction <add>, %44, %cst_32 [0] : vector<128x128xf32> to vector<128xf32>
    %46 = vector.shape_cast %45 : vector<128xf32> to vector<1x128xf32>
    %c0_33 = arith.constant 0 : index
    %c1_34 = arith.constant 1 : index
    %c0_35 = arith.constant 0 : index
    %47 = vector.load %arg3[%c0_33, %c1_34, %c0_35] : memref<1x2x128xf32, #tpu.memory_space<vmem>>, vector<1x1x128xf32>
    %48 = vector.shape_cast %47 : vector<1x1x128xf32> to vector<1x128xf32>
    %49 = arith.addf %46, %48 : vector<1x128xf32>
    %c0_36 = arith.constant 0 : index
    %c1_37 = arith.constant 1 : index
    %c0_38 = arith.constant 0 : index
    %50 = vector.load %arg6[%c0_36, %c1_37, %c0_38] : memref<1x2x128xf32, #tpu.memory_space<vmem>>, vector<1x1x128xf32>
    %51 = vector.shape_cast %50 : vector<1x1x128xf32> to vector<1x128xf32>
    %52 = vector.shape_cast %49 : vector<1x128xf32> to vector<1x1x128xf32>
    tpu.vector_store %arg6[%c0_36, %c1_37, %c0_38], %52 {strides = array<i32>} : memref<1x2x128xf32, #tpu.memory_space<vmem>>, vector<1x1x128xf32>,
    return
  }
  func.func @transform_0(%arg0: i32) -> (i32, i32, i32) {
    %c0_i32 = arith.constant 0 : i32
    %c0_i32_0 = arith.constant 0 : i32
    %c0_i32_1 = arith.constant 0 : i32
    return %arg0, %c0_i32, %c0_i32_0 : i32, i32, i32
  }
  func.func @transform_1(%arg0: i32) -> (i32, i32, i32) {
    %c0_i32 = arith.constant 0 : i32
    %c0_i32_0 = arith.constant 0 : i32
    %c0_i32_1 = arith.constant 0 : i32
    return %arg0, %c0_i32, %c0_i32_0 : i32, i32, i32
  }
  func.func @transform_2(%arg0: i32) -> (i32, i32, i32) {
    %c0_i32 = arith.constant 0 : i32
    %c0_i32_0 = arith.constant 0 : i32
    %c0_i32_1 = arith.constant 0 : i32
    return %arg0, %c0_i32, %c0_i32_0 : i32, i32, i32
  }
  func.func @transform_3(%arg0: i32) -> (i32, i32) {
    %c0_i32 = arith.constant 0 : i32
    %c0_i32_0 = arith.constant 0 : i32
    %c0_i32_1 = arith.constant 0 : i32
    return %c0_i32, %c0_i32_0 : i32, i32
  }
  func.func @transform_4(%arg0: i32) -> (i32, i32) {
    %c0_i32 = arith.constant 0 : i32
    %c0_i32_0 = arith.constant 0 : i32
    %c0_i32_1 = arith.constant 0 : i32
    return %c0_i32, %c0_i32_0 : i32, i32
  }
  func.func @transform_5(%arg0: i32) -> (i32, i32, i32) {
    %c0_i32 = arith.constant 0 : i32
    %c0_i32_0 = arith.constant 0 : i32
    %c0_i32_1 = arith.constant 0 : i32
    return %arg0, %c0_i32, %c0_i32_0 : i32, i32, i32
  }
}

</mosaic_0001>

<bundles_post_ra>
// kernel: tpu_custom_call.1
= control target key start
LH: loop header
LB: loop body
LE: loop exit
PB: predicated region body
PF: predicated region fallthrough
CT: control target
= control target key end

     0   :  { %s3032_s0 = inlined_call_operand.hbm [shape: s32[2,2,128], index: 0, kind: input, shape index: {}]   ;;  %s3033_s1 = inlined_call_operand.hbm [shape: s32[2,2,128], index: 1, kind: input, shape index: {}]   ;;  %s3034_s2 = inlined_call_operand.vmem [shape: f32[2,2,128], index: 2, kind: input, shape index: {}]   ;;  %s3035_s3 = inlined_call_operand.hbm [shape: f32[128,128], index: 3, kind: input, shape index: {}]   ;;  %s3036_s4 = inlined_call_operand.hbm [shape: f32[128,128], index: 4, kind: input, shape index: {}]   ;;  %s3037_s5 = inlined_call_operand.hbm [shape: f32[2,2,128], index: 5, kind: output, shape index: {}]  }
   0x1   :  { %3042 = sst [smem:[#allocation16_spill]] %s3035_s3 }
   0x2   :  { %3043 = sst [smem:[#allocation17_spill]] %s3036_s4 }
   0x3   :  { %10 = vsyncpa [#allocation3], 0 }
   0x4   :  { %12 = vsyncpa [#allocation3 + $0x1], 0 }
   0x5   :  { %13 = vsyncpa [#allocation6], 0 }
   0x6   :  { %15 = vsyncpa [#allocation6 + $0x1], 0 }
   0x7   :  { %16 = vsyncpa [#allocation9], 0 }
   0x8   :  { %17 = vsyncpa [#allocation4], 0 }
   0x9   :  { %19 = vsyncpa [#allocation4 + $0x1], 0  ;;  %s2195_s18 = smov 0   ;;  %s2197_s19 = smov 0  }
   0xa   :  { %s2199_s20 = smov 0   ;;  %s2201_s21 = smov 0  }
   0xb LB: > { %s2216_s22 = sadd.s32 4294967295, %s2155_s21   ;;  %s1318_s23 = sadd.s32 4294967294, %s2155_s21   ;;  %s2155_s21 = sphi %s2201_s21, %s3113_s21   ;;  %s2151_s20 = sphi %s2199_s20, %s3112_s20   ;;  %s2147_s19 = sphi %s2197_s19, %s3111_s19   ;;  %s2143_s18 = sphi %s2195_s18, %s3110_s18  }
   0xc   : > { %p45_p0 = scmp.ne.s32.totalorder %s2147_s19, %s2143_s18  ;;  %p3038_p1 = scmp.eq.s32.totalorder %s2216_s22, 0 }
   0xd   : > { %p169_p3 = scmp.eq.s32.totalorder %s1318_s23, 1  ;;  %p1319_p5 = scmp.ge.s32.totalorder %s2155_s21, 1 }
   0xe   : > { %p2225_p4 = por %p3038_p1, %p45_p0  ;;  %p176_p7 = scmp.lt.s32.totalorder %s2155_s21, 3 }
   0xf   : > { %p2230_p6 = por %p169_p3, %p45_p0  ;;  %s2157_s27 = smov [#allocation7]  }
  0x10   : > { %s3044_s24 = scalar_select %p2225_p4, 1, 0 }
  0x11   : > { %s3045_s25 = scalar_select %p2230_p6, 1, 0 }
  0x12   : > { %p2235_p8 = pnand %p1319_p5, %p176_p7  ;;  %s188_s28 = sshll.u32 %s2157_s27, 4  ;;  %s2239_s28 = int_to_ptr.vmem [resolvable:$true] %s188_s28 }
  0x13   : > { %s2158_s30 = smov [#allocation8]   ;;  %s3048_s3 = sld [smem:[#allocation16_spill]] }
  0x14   : > { %s3046_s26 = scalar_select %p2235_p8, 1, 0 }
  0x15   : > { %p1900_p9 = pneg %p2235_p8  ;;  %s201_s6 = sshll.u32 %s2158_s30, 4  ;;  %s2250_s6 = int_to_ptr.vmem [resolvable:$true] %s201_s6 }
  0x17   : > { %p2246_p11 = pnand %p1900_p9, %p3038_p1 }
  0x19   : > { %s1961_s9 = scalar_lea.hbm %s3048_s3, 2048  ;;  %p1963_p13 = pneg %p2246_p11 }
  0x1a   : > { %p1962_p12 = scmp.ne.s32.totalorder %s3048_s3, %s1961_s9  ;;  %p1968_p5 = scmp.lt.u32.totalorder %s1961_s9, %s3048_s3 }
  0x1c   : > { %p1964_p0 = pnand %p1963_p13, %p1962_p12 }
  0x1e   : > { %p1965_p3 = pneg %p1964_p0 }
  0x20   : > { %p1970_p7 = pnand %p1968_p5, %p1965_p3 }
  0x22   : > { %1973 = shalt.err (!%p1970_p7)
}
  0x23   : > { %s1974_s14 = scalar_lea.vmem %s2239_s28, 2048  ;;  %p1982_p2 = scmp.lt.s32.totalorder %s2239_s28, %s2239_s28 }
  0x24   : > { %p1975_p9 = scmp.ne.s32.totalorder %s2239_s28, %s1974_s14  ;;  %p1983_p12 = scmp.lt.s32.totalorder %s1974_s14, %s1974_s14 }
  0x26   : > { %p1977_p10 = pnand %p1975_p9, %p1963_p13  ;;  %p1984_p0 = por %p1983_p12, %p1982_p2 }
  0x28   : > { %p1978_p1 = pneg %p1977_p10 }
  0x2a   : > { %p1985_p6 = pnand %p1984_p0, %p1978_p1 }
  0x2c   : > { %1988 = shalt.err (!%p1985_p6)
}
  0x2d   : > { %s2159_s15 = smov 128   ;;  %s2160_s16 = smov 8  }
  0x2e   : > { %1903 = dma.hbm_to_vmem [thread:$0]  (!%p2246_p11), %s3048_s3, 2048, %s2239_s28, [#allocation6], %s2159_s15, %s2159_s15, %s2160_s16  }
  0x2f   : > { %s3049_s4 = sld [smem:[#allocation17_spill]] }
  0x35   : > { %s1989_s7 = scalar_lea.hbm %s3049_s4, 2048 }
  0x36   : > { %p1990_p2 = scmp.ne.s32.totalorder %s3049_s4, %s1989_s7  ;;  %p1996_p10 = scmp.lt.u32.totalorder %s1989_s7, %s3049_s4 }
  0x38   : > { %p1992_p1 = pnand %p1990_p2, %p1963_p13 }
  0x3a   : > { %p1993_p6 = pneg %p1992_p1 }
  0x3c   : > { %p1998_p3 = pnand %p1996_p10, %p1993_p6 }
  0x3e   : > { %2001 = shalt.err (!%p1998_p3)
}
  0x3f   : > { %s2002_s28 = scalar_lea.vmem %s2250_s6, 2048  ;;  %p2010_p12 = scmp.lt.s32.totalorder %s2250_s6, %s2250_s6 }
  0x40   : > { %p2003_p5 = scmp.ne.s32.totalorder %s2250_s6, %s2002_s28  ;;  %p2011_p0 = scmp.lt.s32.totalorder %s2002_s28, %s2002_s28 }
  0x42   : > { %p2005_p7 = pnand %p2003_p5, %p1963_p13  ;;  %p2012_p2 = por %p2011_p0, %p2010_p12 }
  0x44   : > { %p2006_p9 = pneg %p2005_p7 }
  0x46   : > { %p2013_p1 = pnand %p2012_p2, %p2006_p9 }
  0x48   : > { %2016 = shalt.err (!%p2013_p1)
}
  0x49   : > { %1906 = dma.hbm_to_vmem [thread:$0]  (!%p2246_p11), %s3049_s4, 2048, %s2250_s6, [#allocation9], %s2159_s15, %s2159_s15, %s2160_s16  }
  0x4a   : > { %s2305_s14 = sadd.s32 1, %s2155_s21   ;;  %s32_s29 = sadd.s32 1, %s2151_s20 }
  0x4b   : > { %s29_s17 = ssub.s32 %s2155_s21, %s2305_s14  ;;  %p39_p13 = scmp.ne.s32.totalorder %s2151_s20, %s2147_s19 }
  0x4c   : > { %p30_p6 = scmp.eq.s32.totalorder %s29_s17, 0  ;;  %p40_p10 = scmp.eq.s32.totalorder %s2155_s21, 0 }
  0x4d   : > { %p3050_p3 = scmp.eq.s32.totalorder %s2216_s22, 1  ;;  %p1920_p7 = scmp.lt.s32.totalorder %s2155_s21, 2 }
  0x4e   : > { %s2321_s27 = scalar_select %p30_p6, %s2151_s20, %s32_s29  }
  0x4f   : > { %p2315_p5 = por %p3050_p3, %p39_p13  ;;  %p41_p9 = por %p40_p10, %p39_p13 }
  0x50   : > { %s215_s30 = sand.u32 1, %s2151_s20   ;;  %s1324_s15 = sshll.u32 %s2155_s21, 5 }
  0x51   : > { %s3051_s23 = scalar_select %p2315_p5, 1, 0 }
  0x52   : > { %s2324_s6 = sshll.u32 %s215_s30, 1  ;;  %s2330_s8 = scalar_lea.hbm %s3032_s0, %s1324_s15 }
  0x53   : > { %s219_s9 = scalar_lea.vmem [#allocation2], %s2324_s6  ;;  %p2335_p11 = pnand %p1920_p7, %p41_p9 }
  0x54   : > { %s226_s10 = sshll.u32 %s219_s9, 4  ;;  %s2342_s13 = scalar_lea.hbm %s3033_s1, %s1324_s15  ;;  %s2333_s10 = int_to_ptr.vmem [resolvable:$true] %s226_s10 }
  0x55   : > { %s233_s29 = sand.u32 1, %s2155_s21   ;;  %s216_s17 = scalar_lea.sflag [#allocation3], %s215_s30 }
  0x56   : > { %s2017_s16 = scalar_lea.hbm %s2330_s8, 32  ;;  %p2019_p0 = pneg %p2335_p11 }
  0x57   : > { %p2018_p12 = scmp.ne.s32.totalorder %s2330_s8, %s2017_s16  ;;  %s2022_s3 = scalar_lea.hbm %s3032_s0, 64 }
  0x58   : > { %p2023_p13 = scmp.lt.u32.totalorder %s2330_s8, %s3032_s0  ;;  %p2024_p6 = scmp.lt.u32.totalorder %s2022_s3, %s2017_s16 }
  0x59   : > { %p2020_p2 = pnand %p2019_p0, %p2018_p12  ;;  %p2026_p3 = scmp.lt.u32.totalorder %s2017_s16, %s2330_s8 }
  0x5a   : > { %p2025_p10 = por %p2024_p6, %p2023_p13 }
  0x5b   : > { %p2021_p1 = pneg %p2020_p2 }
  0x5c   : > { %p2027_p7 = por %p2026_p3, %p2025_p10 }
  0x5e   : > { %p2028_p9 = pnand %p2027_p7, %p2021_p1 }
  0x60   : > { %2031 = shalt.err (!%p2028_p9)
}
  0x61   : > { %s2032_s30 = scalar_lea.vmem %s2333_s10, 32  ;;  %s2161_s15 = smov [#allocation2]  }
  0x62   : > { %p2033_p12 = scmp.ne.s32.totalorder %s2333_s10, %s2032_s30  ;;  %s2037_s12 = sshll.u32 %s2161_s15, 4  ;;  %s2038_s12 = int_to_ptr.vmem [resolvable:$false] %s2037_s12 }
  0x63   : > { %s2039_s4 = scalar_lea.vmem %s2038_s12, 64  ;;  %p2040_p4 = scmp.lt.s32.totalorder %s2333_s10, %s2038_s12 }
  0x64   : > { %p2035_p2 = pnand %p2033_p12, %p2019_p0  ;;  %p2041_p13 = scmp.lt.s32.totalorder %s2039_s4, %s2032_s30 }
  0x66   : > { %p2036_p5 = pneg %p2035_p2  ;;  %p2042_p6 = por %p2041_p13, %p2040_p4 }
  0x68   : > { %p2043_p10 = pnand %p2042_p6, %p2036_p5 }
  0x6a   : > { %2046 = shalt.err (!%p2043_p10)
}
  0x6b   : > { %1910 = dma.hbm_to_vmem [thread:$0]  (!%p2335_p11), %s2330_s8, 32, %s2333_s10, %s216_s17  }
  0x6c   : > { %s237_s3 = scalar_lea.vmem [#allocation5], %s2324_s6  ;;  %s234_s7 = scalar_lea.sflag [#allocation6], %s233_s29 }
  0x6d   : > { %s244_s16 = sshll.u32 %s237_s3, 4  ;;  %s2047_s9 = scalar_lea.hbm %s2342_s13, 32  ;;  %s245_s16 = int_to_ptr.vmem [resolvable:$true] %s244_s16 }
  0x6e   : > { %p2048_p4 = scmp.ne.s32.totalorder %s2342_s13, %s2047_s9  ;;  %s2052_s15 = scalar_lea.hbm %s3033_s1, 64 }
  0x6f   : > { %p2053_p3 = scmp.lt.u32.totalorder %s2342_s13, %s3033_s1  ;;  %p2054_p7 = scmp.lt.u32.totalorder %s2052_s15, %s2047_s9 }
  0x70   : > { %p2050_p5 = pnand %p2048_p4, %p2019_p0  ;;  %p2056_p12 = scmp.lt.u32.totalorder %s2047_s9, %s2342_s13 }
  0x71   : > { %p2055_p9 = por %p2054_p7, %p2053_p3 }
  0x72   : > { %p2051_p1 = pneg %p2050_p5 }
  0x73   : > { %p2057_p2 = por %p2056_p12, %p2055_p9 }
  0x75   : > { %p2058_p13 = pnand %p2057_p2, %p2051_p1 }
  0x77   : > { %2061 = shalt.err (!%p2058_p13)
}
  0x78   : > { %s2062_s6 = scalar_lea.vmem %s245_s16, 32  ;;  %s2162_s8 = smov [#allocation5]  }
  0x79   : > { %p2063_p6 = scmp.ne.s32.totalorder %s245_s16, %s2062_s6  ;;  %s2067_s10 = sshll.u32 %s2162_s8, 4  ;;  %s2068_s10 = int_to_ptr.vmem [resolvable:$false] %s2067_s10 }
  0x7a   : > { %s2069_s29 = scalar_lea.vmem %s2068_s10, 64  ;;  %p2070_p5 = scmp.lt.s32.totalorder %s245_s16, %s2068_s10 }
  0x7b   : > { %p2065_p10 = pnand %p2063_p6, %p2019_p0  ;;  %p2071_p8 = scmp.lt.s32.totalorder %s2069_s29, %s2062_s6 }
  0x7d   : > { %p2066_p4 = pneg %p2065_p10  ;;  %p2072_p3 = por %p2071_p8, %p2070_p5 }
  0x7f   : > { %p2073_p7 = pnand %p2072_p3, %p2066_p4 }
  0x81   : > { %2076 = shalt.err (!%p2073_p7)
}
  0x82   : > { %1913 = dma.hbm_to_vmem [thread:$0]  (!%p2335_p11), %s2342_s13, 32, %s245_s16, %s234_s7  }
  0x83   : > { %p3053_p1 = scmp.ne.s32.totalorder %s3046_s26, 0 }
  0x84   : > { %s2395_s17 = sand.u32 (!%p3053_p1), 1, %s2147_s19   ;;  %p3054_p8 = scmp.ne.s32.totalorder (!%p3053_p1), %s3044_s24, 0 }
  0x85   : > { %260 = sbr.rel (%p3053_p1) target bundleno = 499 (0x1f3), region = 40  ;;  %s2398_s3 = sshll.u32 (!%p3053_p1), %s2395_s17, 1 }
  0x86   : > { %s263_s9 = scalar_lea.sflag (!%p3053_p1), [#allocation3], %s2395_s17  ;;  %s266_s28 = scalar_lea.vmem (!%p3053_p1), [#allocation2], %s2398_s3 }
  0x8c   : > { %2122 = dma.done.wait (%p3054_p8), %s263_s9, 32  }
  0x8d   : > { %2124 = vsyncadd (%p3054_p8), %s263_s9, 4294967264  ;;  %s271_s26 = sand.u32 1, %s2216_s22   ;;  %s275_s13 = scalar_lea.vmem [#allocation5], %s2398_s3 }
  0x8e   : > { %s272_s11 = scalar_lea.sflag [#allocation6], %s271_s26 }
  0x8f   : > { %2126 = dma.done.wait (%p3054_p8), %s272_s11, 32  }
  0x90   : > { %2128 = vsyncadd (%p3054_p8), %s272_s11, 4294967264  ;;  %p3055_p11 = scmp.eq.s32.totalorder %s2216_s22, 0 }
  0x92   : > { %2130 = dma.done.wait (%p3055_p11), [#allocation6], 2048   ;;  %p3056_p0 = pmov %p3055_p11 }
  0x94   : > { %2132 = vsyncadd (%p3056_p0), [#allocation6], 4294965248  ;;  %p3057_p9 = pmov %p3056_p0 }
  0x95   : > { %p3058_p12 = pmov %p3056_p0 }
  0x96   : > { %2134 = dma.done.wait (%p3057_p9), [#allocation9], 2048  }
  0x97   : > { %2136 = vsyncadd (%p3058_p12), [#allocation9], 4294965248  ;;  %v355_v0 = vlaneseq  ;;  %v2439_v7 = vld [vmem:[%s266_s28] ss:$0 sm:$0xff]  ;;  %v2443_v8 = vld [vmem:[%s275_s13] ss:$0 sm:$0xff] }
  0x98   : > { %v2453_v9 = vld [vmem:[#allocation7] sm:$0xff]  ;;  %v2163_v10 = vmov 1.0|1.0   ;;  %v2646_v32 = vld [vmem:[%s266_s28 + $0x1] ss:$0 sm:$0xff]  ;;  %v2686_v36 = vld [vmem:[#allocation7 + $0x8] sm:$0xff] }
  0x99   : > { %v2420_v1 = vshrl.u32 %v355_v0, 7  ;;  %1566 = vmatprep.mubr.f32.mxu0 %v2453_v9  ;;  %v2481_v13 = vld [vmem:[#allocation8] sm:$0xff]  ;;  %v2656_v33 = vld [vmem:[%s275_s13 + $0x1] ss:$0 sm:$0xff]  ;;  %v2693_v37 = vld [vmem:[#allocation8 + $0x8] sm:$0xff]  ;;  %p319_p2 = scmp.lt.s32.totalorder %s2216_s22, 1 }
  0x9a   : > { %1622 = vmatprep.mubr.f32.mxu1 %v2481_v13  ;;  %v2705_v38 = vld [vmem:[#allocation7 + $0x10] sm:$0xff]  ;;  %v2718_v41 = vld [vmem:[#allocation7 + $0x18] sm:$0xff]  ;;  %v2742_v44 = vld [vmem:[#allocation7 + $0x20] sm:$0xff]  ;;  %s2978_s12 = scalar_lea.vmem [#allocation10], %s2398_s3  ;;  %s1403_s4 = sshll.u32 %s2216_s22, 5 }
  0x9b   : > { %v2423_v2 = vadd.s32 8, %v2420_v1  ;;  %v2426_v3 = vadd.s32 16, %v2420_v1  ;;  %v2429_v4 = vadd.s32 24, %v2420_v1  ;;  %v2432_v5 = vadd.s32 32, %v2420_v1  ;;  %v2708_v39 = vld [vmem:[#allocation8 + $0x10] sm:$0xff]  ;;  %v2732_v43 = vld [vmem:[#allocation8 + $0x18] sm:$0xff]  ;;  %s2987_s29 = scalar_lea.hbm %s3037_s5, %s1403_s4 }
  0x9c   : > { %v2435_v6 = vadd.s32 40, %v2420_v1  ;;  %vm378_vm0 = vcmp.eq.s32.totalorder %v2420_v1, %v2439_v7  ;;  %vm414_vm2 = vcmp.eq.s32.totalorder %v2420_v1, %v2443_v8  ;;  %v2470_v11 = vadd.s32 48, %v2420_v1  ;;  %v2748_v45 = vld [vmem:[#allocation8 + $0x20] sm:$0xff]  ;;  %v2758_v47 = vld [vmem:[#allocation7 + $0x28] sm:$0xff]  ;;  %v2782_v50 = vld [vmem:[#allocation7 + $0x30] sm:$0xff]  ;;  %s320_s24 = scalar_select %p319_p2, %s2216_s22, 1 }
  0x9d   : > { %vm379_vm1 = vcmp.eq.s32.totalorder %v2423_v2, %v2439_v7  ;;  %vm415_vm3 = vcmp.eq.s32.totalorder %v2423_v2, %v2443_v8  ;;  %vm380_vm5 = vcmp.eq.s32.totalorder %v2426_v3, %v2439_v7  ;;  %vm381_vm6 = vcmp.eq.s32.totalorder %v2429_v4, %v2439_v7  ;;  %v2772_v49 = vld [vmem:[#allocation8 + $0x28] sm:$0xff]  ;;  %v2788_v51 = vld [vmem:[#allocation8 + $0x30] sm:$0xff]  ;;  %v2798_v53 = vld [vmem:[#allocation7 + $0x38] sm:$0xff]  ;;  %s1194_s6 = sshll.u32 %s2978_s12, 4  ;;  %s1181_s3 = scalar_lea.sflag [#allocation4], %s2395_s17  ;;  %s2989_s6 = int_to_ptr.vmem [resolvable:$true] %s1194_s6 }
  0x9e   : > { %vm1758_vm4 = vmpackc.low %vm379_vm1, %vm378_vm0  ;;  %vm416_vm7 = vcmp.eq.s32.totalorder %v2426_v3, %v2443_v8  ;;  %vm417_vm8 = vcmp.eq.s32.totalorder %v2429_v4, %v2443_v8  ;;  %vm382_vm10 = vcmp.eq.s32.totalorder %v2432_v5, %v2439_v7  ;;  %vm383_vm11 = vcmp.eq.s32.totalorder %v2435_v6, %v2439_v7  ;;  %v2812_v55 = vld [vmem:[#allocation8 + $0x38] sm:$0xff]  ;;  %v2822_v56 = vld [vmem:[#allocation7 + $0x40] sm:$0xff]  ;;  %s1333_s16 = sshll.u32 %s320_s24, 1  ;;  %s2077_s9 = scalar_lea.vmem %s2989_s6, 32 }
  0x9f   : > { %1759 = vmatprep.subr.msk.bf16.mxu0 %vm1758_vm4, %v2163_v10  ;;  %vm1790_vm9 = vmpackc.low %vm415_vm3, %vm414_vm2  ;;  %v2473_v12 = vadd.s32 56, %v2420_v1  ;;  %vm418_vm13 = vcmp.eq.s32.totalorder %v2432_v5, %v2443_v8  ;;  %vm419_vm14 = vcmp.eq.s32.totalorder %v2435_v6, %v2443_v8  ;;  %vm384_vm2 = vcmp.eq.s32.totalorder %v2470_v11, %v2439_v7  ;;  %v2828_v57 = vld [vmem:[#allocation8 + $0x40] sm:$0xff]  ;;  %v2838_v59 = vld [vmem:[#allocation7 + $0x48] sm:$0xff]  ;;  %s2974_s15 = scalar_lea.vmem %s3034_s2, %s1333_s16  ;;  %p2078_p13 = scmp.ne.s32.totalorder %s2989_s6, %s2077_s9 }
  0xa0   : > { %1791 = vmatprep.subr.msk.bf16.mxu1 %vm1790_vm9, %v2163_v10  ;;  %1761 = vmatpush3.bf16.msk.msra.mxu0 %vm1758_vm4, %v2163_v10  ;;  %vm1762_vm12 = vmpackc.low %vm381_vm6, %vm380_vm5  ;;  %v2505_v16 = vadd.s32 64, %v2420_v1  ;;  %v2508_v17 = vadd.s32 72, %v2420_v1  ;;  %vm420_vm4 = vcmp.eq.s32.totalorder %v2470_v11, %v2443_v8  ;;  %v2536_v20 = vadd.s32 80, %v2420_v1  ;;  %v2852_v61 = vld [vmem:[#allocation8 + $0x48] sm:$0xff]  ;;  %v2862_v62 = vld [vmem:[#allocation7 + $0x50] sm:$0xff]  ;;  %p3107_p6 = scmp.ne.s32.totalorder %s3051_s23, 0 }
  0xa1   : > { %1793 = vmatpush3.bf16.msk.msra.mxu1 %vm1790_vm9, %v2163_v10  ;;  %1763 = vmatprep.subr.msk.bf16.mxu0 %vm1762_vm12, %v2163_v10  ;;  %vm1794_vm15 = vmpackc.low %vm417_vm8, %vm416_vm7  ;;  %vm385_vm3 = vcmp.eq.s32.totalorder %v2473_v12, %v2439_v7  ;;  %vm421_vm5 = vcmp.eq.s32.totalorder %v2473_v12, %v2443_v8  ;;  %v2539_v21 = vadd.s32 88, %v2420_v1  ;;  %v2570_v24 = vadd.s32 96, %v2420_v1  ;;  %v2868_v63 = vld [vmem:[#allocation8 + $0x50] sm:$0xff]  ;;  %v338_v15 = vld [vmem:[#allocation7 + $0x78] sm:$0xff]  ;;  %s2164_s22 = smov [#allocation10]  }
  0xa2   : > { %1795 = vmatprep.subr.msk.bf16.mxu1 %vm1794_vm15, %v2163_v10  ;;  %vm2492_vm0 = vmpackc.low %vm383_vm11, %vm382_vm10  ;;  %vm386_vm8 = vcmp.eq.s32.totalorder %v2505_v16, %v2439_v7  ;;  %vm387_vm9 = vcmp.eq.s32.totalorder %v2508_v17, %v2439_v7  ;;  %vm422_vm10 = vcmp.eq.s32.totalorder %v2505_v16, %v2443_v8  ;;  %vm423_vm11 = vcmp.eq.s32.totalorder %v2508_v17, %v2443_v8  ;;  %v353_v14 = vld [vmem:[#allocation8 + $0x70] sm:$0xff]  ;;  %p2079_p10 = pnand %p2078_p13, %p3107_p6  ;;  %s2081_s28 = sshll.u32 %s2164_s22, 4  ;;  %s2082_s28 = int_to_ptr.vmem [resolvable:$false] %s2081_s28 }
  0xa3   : > { %vm2496_vm1 = vmpackc.low %vm419_vm14, %vm418_vm13  ;;  %vm388_vm14 = vcmp.eq.s32.totalorder %v2536_v20, %v2439_v7  ;;  %v2573_v25 = vadd.s32 104, %v2420_v1  ;;  %v2604_v28 = vadd.s32 112, %v2420_v1  ;;  %v2607_v29 = vadd.s32 120, %v2420_v1  ;;  %s2083_s26 = scalar_lea.vmem %s2082_s28, 64  ;;  %p2084_p5 = scmp.lt.s32.totalorder %s2989_s6, %s2082_s28 }
  0xa4   : > { %1765 = vmatpush3.bf16.msk.msra.mxu0 %vm1762_vm12, %v2163_v10  ;;  %vm2523_vm6 = vmpackc.low %vm385_vm3, %vm384_vm2  ;;  %p2080_p4 = pneg %p2079_p10  ;;  %p2085_p3 = scmp.lt.s32.totalorder %s2083_s26, %s2077_s9 }
  0xa5   : > { %1797 = vmatpush3.bf16.msk.msra.mxu1 %vm1794_vm15, %v2163_v10  ;;  %1767 = vmatprep.subr.msk.bf16.mxu0 %vm2492_vm0, %v2163_v10  ;;  %vm2527_vm7 = vmpackc.low %vm421_vm5, %vm420_vm4  ;;  %vm389_vm15 = vcmp.eq.s32.totalorder %v2539_v21, %v2439_v7  ;;  %vm390_vm4 = vcmp.eq.s32.totalorder %v2570_v24, %v2439_v7  ;;  %vm391_vm5 = vcmp.eq.s32.totalorder %v2573_v25, %v2439_v7 }
  0xa6   : > { %1799 = vmatprep.subr.msk.bf16.mxu1 %vm2496_vm1, %v2163_v10  ;;  %vm2557_vm12 = vmpackc.low %vm387_vm9, %vm386_vm8  ;;  %p2086_p7 = por %p2085_p3, %p2084_p5 }
  0xa7   : > { %vm2561_vm13 = vmpackc.low %vm423_vm11, %vm422_vm10  ;;  %vm392_vm10 = vcmp.eq.s32.totalorder %v2604_v28, %v2439_v7  ;;  %vm393_vm11 = vcmp.eq.s32.totalorder %v2607_v29, %v2439_v7  ;;  %v336_v7 = vld [vmem:[#allocation7 + $0x68] sm:$0xff] }
  0xa8   : > { %1769 = vmatpush3.bf16.msk.msra.mxu0 %vm2492_vm0, %v2163_v10  ;;  %vm424_vm0 = vcmp.eq.s32.totalorder %v2536_v20, %v2443_v8  ;;  %vm2591_vm2 = vmpackc.low %vm389_vm15, %vm388_vm14  ;;  %p2087_p1 = pnand %p2086_p7, %p2080_p4 }
  0xa9   : > { %1801 = vmatpush3.bf16.msk.msra.mxu1 %vm2496_vm1, %v2163_v10  ;;  %1771 = vmatprep.subr.msk.bf16.mxu0 %vm2523_vm6, %v2163_v10  ;;  %vm425_vm1 = vcmp.eq.s32.totalorder %v2539_v21, %v2443_v8  ;;  %vm2625_vm8 = vmpackc.low %vm391_vm5, %vm390_vm4 }
  0xaa   : > { %1803 = vmatprep.subr.msk.bf16.mxu1 %vm2527_vm7, %v2163_v10  ;;  %vm2595_vm3 = vmpackc.low %vm425_vm1, %vm424_vm0  ;;  %vm782_vm0 = vcmp.eq.s32.totalorder %v2420_v1, %v2646_v32  ;;  %vm783_vm1 = vcmp.eq.s32.totalorder %v2423_v2, %v2646_v32 }
  0xab   : > { %vm1786_vm14 = vmpackc.low %vm393_vm11, %vm392_vm10 }
  0xac   : > { %1773 = vmatpush3.bf16.msk.msra.mxu0 %vm2523_vm6, %v2163_v10  ;;  %vm426_vm6 = vcmp.eq.s32.totalorder %v2570_v24, %v2443_v8  ;;  %vm2677_vm4 = vmpackc.low %vm783_vm1, %vm782_vm0 }
  0xad   : > { %1805 = vmatpush3.bf16.msk.msra.mxu1 %vm2527_vm7, %v2163_v10  ;;  %1775 = vmatprep.subr.msk.bf16.mxu0 %vm2557_vm12, %v2163_v10  ;;  %vm427_vm7 = vcmp.eq.s32.totalorder %v2573_v25, %v2443_v8 }
  0xae   : > { %1807 = vmatprep.subr.msk.bf16.mxu1 %vm2561_vm13, %v2163_v10  ;;  %vm2629_vm9 = vmpackc.low %vm427_vm7, %vm426_vm6  ;;  %vm784_vm6 = vcmp.eq.s32.totalorder %v2426_v3, %v2646_v32  ;;  %vm785_vm7 = vcmp.eq.s32.totalorder %v2429_v4, %v2646_v32 }
  0xaf   : > { %vm2710_vm10 = vmpackc.low %vm785_vm7, %vm784_vm6 }
  0xb0   : > { %1777 = vmatpush3.bf16.msk.msra.mxu0 %vm2557_vm12, %v2163_v10  ;;  %vm428_vm12 = vcmp.eq.s32.totalorder %v2604_v28, %v2443_v8 }
  0xb1   : > { %1809 = vmatpush3.bf16.msk.msra.mxu1 %vm2561_vm13, %v2163_v10  ;;  %1779 = vmatprep.subr.msk.bf16.mxu0 %vm2591_vm2, %v2163_v10  ;;  %vm429_vm13 = vcmp.eq.s32.totalorder %v2607_v29, %v2443_v8 }
  0xb2   : > { %1811 = vmatprep.subr.msk.bf16.mxu1 %vm2595_vm3, %v2163_v10  ;;  %vm1818_vm15 = vmpackc.low %vm429_vm13, %vm428_vm12  ;;  %vm786_vm12 = vcmp.eq.s32.totalorder %v2432_v5, %v2646_v32  ;;  %vm787_vm13 = vcmp.eq.s32.totalorder %v2435_v6, %v2646_v32 }
  0xb3   : > { %vm2750_vm0 = vmpackc.low %vm787_vm13, %vm786_vm12 }
  0xb4   : > { %1781 = vmatpush3.bf16.msk.msra.mxu0 %vm2591_vm2, %v2163_v10  ;;  %vm818_vm2 = vcmp.eq.s32.totalorder %v2420_v1, %v2656_v33  ;;  %v2878_v1 = vld [vmem:[#allocation7 + $0x58] sm:$0xff] }
  0xb5   : > { %1813 = vmatpush3.bf16.msk.msra.mxu1 %vm2595_vm3, %v2163_v10  ;;  %1783 = vmatprep.subr.msk.bf16.mxu0 %vm2625_vm8, %v2163_v10  ;;  %vm819_vm3 = vcmp.eq.s32.totalorder %v2423_v2, %v2656_v33 }
  0xb6   : > { %1815 = vmatprep.subr.msk.bf16.mxu1 %vm2629_vm9, %v2163_v10  ;;  %vm2681_vm5 = vmpackc.low %vm819_vm3, %vm818_vm2  ;;  %vm788_vm2 = vcmp.eq.s32.totalorder %v2470_v11, %v2646_v32  ;;  %vm789_vm3 = vcmp.eq.s32.totalorder %v2473_v12, %v2646_v32 }
  0xb7   : > { %vm2790_vm6 = vmpackc.low %vm789_vm3, %vm788_vm2 }
  0xb8   : > { %1785 = vmatpush3.bf16.msk.msra.mxu0 %vm2625_vm8, %v2163_v10  ;;  %vm820_vm8 = vcmp.eq.s32.totalorder %v2426_v3, %v2656_v33  ;;  %v2892_v3 = vld [vmem:[#allocation8 + $0x58] sm:$0xff] }
  0xb9   : > { %1817 = vmatpush3.bf16.msk.msra.mxu1 %vm2629_vm9, %v2163_v10  ;;  %1787 = vmatprep.subr.msk.bf16.mxu0 %vm1786_vm14, %v2163_v10  ;;  %vm821_vm9 = vcmp.eq.s32.totalorder %v2429_v4, %v2656_v33  ;;  %v335_v4 = vld [vmem:[#allocation7 + $0x60] sm:$0xff] }
  0xba   : > { %1819 = vmatprep.subr.msk.bf16.mxu1 %vm1818_vm15, %v2163_v10  ;;  %vm2720_vm11 = vmpackc.low %vm821_vm9, %vm820_vm8  ;;  %vm790_vm8 = vcmp.eq.s32.totalorder %v2505_v16, %v2646_v32  ;;  %vm791_vm9 = vcmp.eq.s32.totalorder %v2508_v17, %v2646_v32 }
  0xbb   : > { %vm2830_vm12 = vmpackc.low %vm791_vm9, %vm790_vm8 }
  0xbc   : > { %1789 = vmatpush3.bf16.msk.msra.mxu0 %vm1786_vm14, %v2163_v10  ;;  %vm822_vm14 = vcmp.eq.s32.totalorder %v2432_v5, %v2656_v33  ;;  %v351_v5 = vld [vmem:[#allocation8 + $0x60] sm:$0xff] }
  0xbd   : > { %1821 = vmatpush3.bf16.msk.msra.mxu1 %vm1818_vm15, %v2163_v10  ;;  %1823 = vmatprep.subr.msk.bf16.mxu0 %vm2677_vm4, %v2163_v10  ;;  %vm823_vm15 = vcmp.eq.s32.totalorder %v2435_v6, %v2656_v33 }
  0xbe   : > { %1855 = vmatprep.subr.msk.bf16.mxu1 %vm2681_vm5, %v2163_v10  ;;  %vm2760_vm1 = vmpackc.low %vm823_vm15, %vm822_vm14  ;;  %vm792_vm14 = vcmp.eq.s32.totalorder %v2536_v20, %v2646_v32  ;;  %vm793_vm15 = vcmp.eq.s32.totalorder %v2539_v21, %v2646_v32 }
  0xbf   : > { %1567 = vmatmul.mubr.f32.vlgmr.msra.gmra.mrb[0].mxu0 %v2686_v36  ;;  %vm2870_vm2 = vmpackc.low %vm793_vm15, %vm792_vm14 }
  0xc0   : > { %1623 = vmatmul.mubr.f32.vlgmr.msra.gmra.mrb[0].mxu1 %v2693_v37  ;;  %1825 = vmatpush3.bf16.msk.msra.mxu0 %vm2677_vm4, %v2163_v10  ;;  %vm824_vm4 = vcmp.eq.s32.totalorder %v2470_v11, %v2656_v33  ;;  %v352_v11 = vld [vmem:[#allocation8 + $0x68] sm:$0xff] }
  0xc1   : > { %1857 = vmatpush3.bf16.msk.msra.mxu1 %vm2681_vm5, %v2163_v10  ;;  %1569 = vmatprep.mubr.f32.mxu0 %v2705_v38  ;;  %vm825_vm5 = vcmp.eq.s32.totalorder %v2473_v12, %v2656_v33  ;;  %v337_v12 = vld [vmem:[#allocation7 + $0x70] sm:$0xff] }
  0xc2   : > { %1625 = vmatprep.mubr.f32.mxu1 %v2708_v39  ;;  %1827 = vmatprep.subr.msk.bf16.mxu0 %vm2710_vm10, %v2163_v10  ;;  %vm2800_vm7 = vmpackc.low %vm825_vm5, %vm824_vm4  ;;  %vm794_vm4 = vcmp.eq.s32.totalorder %v2570_v24, %v2646_v32  ;;  %vm795_vm5 = vcmp.eq.s32.totalorder %v2573_v25, %v2646_v32 }
  0xc3   : > { %1570 = vmatmul.mubr.f32.gmra.mrb[2].mxu0 %v2718_v41  ;;  %1859 = vmatprep.subr.msk.bf16.mxu1 %vm2720_vm11, %v2163_v10  ;;  %vm2906_vm8 = vmpackc.low %vm795_vm5, %vm794_vm4 }
  0xc4   : > { %1626 = vmatmul.mubr.f32.gmra.mrb[2].mxu1 %v2732_v43  ;;  %1829 = vmatpush3.bf16.msk.msra.mxu0 %vm2710_vm10, %v2163_v10  ;;  %vm826_vm10 = vcmp.eq.s32.totalorder %v2505_v16, %v2656_v33  ;;  %v354_v16 = vld [vmem:[#allocation8 + $0x78] sm:$0xff] }
  0xc5   : > { %1861 = vmatpush3.bf16.msk.msra.mxu1 %vm2720_vm11, %v2163_v10  ;;  %1572 = vmatprep.mubr.f32.mxu0 %v2742_v44  ;;  %vm827_vm11 = vcmp.eq.s32.totalorder %v2508_v17, %v2656_v33 }
  0xc6   : > { %1628 = vmatprep.mubr.f32.mxu1 %v2748_v45  ;;  %1831 = vmatprep.subr.msk.bf16.mxu0 %vm2750_vm0, %v2163_v10  ;;  %vm2840_vm13 = vmpackc.low %vm827_vm11, %vm826_vm10  ;;  %vm796_vm10 = vcmp.eq.s32.totalorder %v2604_v28, %v2646_v32  ;;  %vm797_vm11 = vcmp.eq.s32.totalorder %v2607_v29, %v2646_v32 }
  0xc7   : > { %1573 = vmatmul.mubr.f32.gmra.mrb[4].mxu0 %v2758_v47  ;;  %1863 = vmatprep.subr.msk.bf16.mxu1 %vm2760_vm1, %v2163_v10  ;;  %vm1850_vm14 = vmpackc.low %vm797_vm11, %vm796_vm10 }
  0xc8   : > { %1629 = vmatmul.mubr.f32.gmra.mrb[4].mxu1 %v2772_v49  ;;  %1833 = vmatpush3.bf16.msk.msra.mxu0 %vm2750_vm0, %v2163_v10  ;;  %vm828_vm0 = vcmp.eq.s32.totalorder %v2536_v20, %v2656_v33 }
  0xc9   : > { %1865 = vmatpush3.bf16.msk.msra.mxu1 %vm2760_vm1, %v2163_v10  ;;  %1575 = vmatprep.mubr.f32.mxu0 %v2782_v50  ;;  %vm829_vm1 = vcmp.eq.s32.totalorder %v2539_v21, %v2656_v33 }
  0xca   : > { %1631 = vmatprep.mubr.f32.mxu1 %v2788_v51  ;;  %1835 = vmatprep.subr.msk.bf16.mxu0 %vm2790_vm6, %v2163_v10  ;;  %vm2880_vm3 = vmpackc.low %vm829_vm1, %vm828_vm0 }
  0xcb   : > { %1576 = vmatmul.mubr.f32.gmra.mrb[6].mxu0 %v2798_v53  ;;  %1867 = vmatprep.subr.msk.bf16.mxu1 %vm2800_vm7, %v2163_v10 }
  0xcc   : > { %1632 = vmatmul.mubr.f32.gmra.mrb[6].mxu1 %v2812_v55  ;;  %1837 = vmatpush3.bf16.msk.msra.mxu0 %vm2790_vm6, %v2163_v10  ;;  %vm830_vm6 = vcmp.eq.s32.totalorder %v2570_v24, %v2656_v33 }
  0xcd   : > { %1869 = vmatpush3.bf16.msk.msra.mxu1 %vm2800_vm7, %v2163_v10  ;;  %1578 = vmatprep.mubr.f32.mxu0 %v2822_v56  ;;  %vm831_vm7 = vcmp.eq.s32.totalorder %v2573_v25, %v2656_v33 }
  0xce   : > { %1634 = vmatprep.mubr.f32.mxu1 %v2828_v57  ;;  %1839 = vmatprep.subr.msk.bf16.mxu0 %vm2830_vm12, %v2163_v10  ;;  %vm2914_vm9 = vmpackc.low %vm831_vm7, %vm830_vm6 }
  0xcf   : > { %1579 = vmatmul.mubr.f32.gmra.mrb[8].mxu0 %v2838_v59  ;;  %1871 = vmatprep.subr.msk.bf16.mxu1 %vm2840_vm13, %v2163_v10 }
  0xd0   : > { %1635 = vmatmul.mubr.f32.gmra.mrb[8].mxu1 %v2852_v61  ;;  %1841 = vmatpush3.bf16.msk.msra.mxu0 %vm2830_vm12, %v2163_v10  ;;  %vm832_vm12 = vcmp.eq.s32.totalorder %v2604_v28, %v2656_v33 }
  0xd1   : > { %1873 = vmatpush3.bf16.msk.msra.mxu1 %vm2840_vm13, %v2163_v10  ;;  %1581 = vmatprep.mubr.f32.mxu0 %v2862_v62  ;;  %vm833_vm13 = vcmp.eq.s32.totalorder %v2607_v29, %v2656_v33 }
  0xd2   : > { %1637 = vmatprep.mubr.f32.mxu1 %v2868_v63  ;;  %1843 = vmatprep.subr.msk.bf16.mxu0 %vm2870_vm2, %v2163_v10  ;;  %vm1882_vm15 = vmpackc.low %vm833_vm13, %vm832_vm12 }
  0xd3   : > { %1582 = vmatmul.mubr.f32.gmra.mrb[10].mxu0 %v2878_v1  ;;  %1875 = vmatprep.subr.msk.bf16.mxu1 %vm2880_vm3, %v2163_v10 }
  0xd4   : > { %1638 = vmatmul.mubr.f32.gmra.mrb[10].mxu1 %v2892_v3  ;;  %1845 = vmatpush3.bf16.msk.msra.mxu0 %vm2870_vm2, %v2163_v10 }
  0xd5   : > { %1877 = vmatpush3.bf16.msk.msra.mxu1 %vm2880_vm3, %v2163_v10  ;;  %1584 = vmatprep.mubr.f32.mxu0 %v335_v4 }
  0xd6   : > { %1640 = vmatprep.mubr.f32.mxu1 %v351_v5  ;;  %1847 = vmatprep.subr.msk.bf16.mxu0 %vm2906_vm8, %v2163_v10 }
  0xd7   : > { %1585 = vmatmul.mubr.f32.gmra.mrb[12].mxu0 %v336_v7  ;;  %1879 = vmatprep.subr.msk.bf16.mxu1 %vm2914_vm9, %v2163_v10 }
  0xd8   : > { %1641 = vmatmul.mubr.f32.gmra.mrb[12].mxu1 %v352_v11  ;;  %1849 = vmatpush3.bf16.msk.msra.mxu0 %vm2906_vm8, %v2163_v10 }
  0xd9   : > { %1881 = vmatpush3.bf16.msk.msra.mxu1 %vm2914_vm9, %v2163_v10  ;;  %1587 = vmatprep.mubr.f32.mxu0 %v337_v12 }
  0xda   : > { %1643 = vmatprep.mubr.f32.mxu1 %v353_v14  ;;  %1851 = vmatprep.subr.msk.bf16.mxu0 %vm1850_vm14, %v2163_v10 }
  0xdb   : > { %1588 = vmatmul.mubr.f32.gmra.mrb[14].mxu0 %v338_v15  ;;  %1883 = vmatprep.subr.msk.bf16.mxu1 %vm1882_vm15, %v2163_v10 }
  0xdc   : > { %1644 = vmatmul.mubr.f32.gmra.mrb[14].mxu1 %v354_v16  ;;  %1853 = vmatpush3.bf16.msk.msra.mxu0 %vm1850_vm14, %v2163_v10 }
  0xdd   : > { %1885 = vmatpush3.bf16.msk.msra.mxu1 %vm1882_vm15, %v2163_v10  ;;  %1678 = vmatprep.mubr.f32.mxu0 %v2453_v9 }
  0xde   : > { %1734 = vmatprep.mubr.f32.mxu1 %v2481_v13 }
  0xdf   : > { %1679 = vmatmul.mubr.f32.vlgmr.msra.gmra.mrb[16].mxu0 %v2686_v36 }
  0xe0   : > { %1735 = vmatmul.mubr.f32.vlgmr.msra.gmra.mrb[16].mxu1 %v2693_v37  ;;  %1681 = vmatprep.mubr.f32.mxu0 %v2705_v38 }
  0xe1   : > { %1737 = vmatprep.mubr.f32.mxu1 %v2708_v39 }
  0xe3   : > { %1682 = vmatmul.mubr.f32.gmra.mrb[18].mxu0 %v2718_v41 }
  0xe4   : > { %1738 = vmatmul.mubr.f32.gmra.mrb[18].mxu1 %v2732_v43  ;;  %1684 = vmatprep.mubr.f32.mxu0 %v2742_v44 }
  0xe5   : > { %1740 = vmatprep.mubr.f32.mxu1 %v2748_v45 }
  0xe7   : > { %1685 = vmatmul.mubr.f32.gmra.mrb[20].mxu0 %v2758_v47 }
  0xe8   : > { %1741 = vmatmul.mubr.f32.gmra.mrb[20].mxu1 %v2772_v49  ;;  %1687 = vmatprep.mubr.f32.mxu0 %v2782_v50 }
  0xe9   : > { %1743 = vmatprep.mubr.f32.mxu1 %v2788_v51 }
  0xeb   : > { %1688 = vmatmul.mubr.f32.gmra.mrb[22].mxu0 %v2798_v53 }
  0xec   : > { %1744 = vmatmul.mubr.f32.gmra.mrb[22].mxu1 %v2812_v55  ;;  %1690 = vmatprep.mubr.f32.mxu0 %v2822_v56 }
  0xed   : > { %1746 = vmatprep.mubr.f32.mxu1 %v2828_v57 }
  0xef   : > { %1691 = vmatmul.mubr.f32.gmra.mrb[24].mxu0 %v2838_v59 }
  0xf0   : > { %1747 = vmatmul.mubr.f32.gmra.mrb[24].mxu1 %v2852_v61  ;;  %1693 = vmatprep.mubr.f32.mxu0 %v2862_v62 }
  0xf1   : > { %1749 = vmatprep.mubr.f32.mxu1 %v2868_v63 }
  0xf3   : > { %1694 = vmatmul.mubr.f32.gmra.mrb[26].mxu0 %v2878_v1 }
  0xf4   : > { %1750 = vmatmul.mubr.f32.gmra.mrb[26].mxu1 %v2892_v3  ;;  %1696 = vmatprep.mubr.f32.mxu0 %v335_v4 }
  0xf5   : > { %1752 = vmatprep.mubr.f32.mxu1 %v351_v5 }
  0xf7   : > { %1697 = vmatmul.mubr.f32.gmra.mrb[28].mxu0 %v336_v7 }
  0xf8   : > { %1753 = vmatmul.mubr.f32.gmra.mrb[28].mxu1 %v352_v11  ;;  %1699 = vmatprep.mubr.f32.mxu0 %v337_v12 }
  0xf9   : > { %1755 = vmatprep.mubr.f32.mxu1 %v353_v14 }
  0xfb   : > { %1700 = vmatmul.mubr.f32.gmra.mrb[30].mxu0 %v338_v15 }
  0xfc   : > { %1756 = vmatmul.mubr.f32.gmra.mrb[30].mxu1 %v354_v16 }
 0x192   : > { %v1568_v9 = vpop.f32.mrb[0].mxu0 }
 0x193   : > { %v1624_v10 = vpop.f32.mrb[0].mxu1  ;;  %v512_v13 = vpop.f32.mrb[1].mxu0 }
 0x194   : > { %v737_v17 = vmul.f32 %v1624_v10, %v1568_v9  ;;  %v657_v18 = vpop.f32.mrb[1].mxu1 }
 0x195   : > { %v736_v19 = vmul.f32 %v657_v18, %v512_v13 }
 0x196   : > { %v1571_v20 = vpop.f32.mrb[2].mxu0 }
 0x197   : > { %v752_v21 = vadd.f32 %v737_v17, %v736_v19  ;;  %v1627_v22 = vpop.f32.mrb[2].mxu1  ;;  %v522_v23 = vpop.f32.mrb[3].mxu0 }
 0x198   : > { %v739_v24 = vmul.f32 %v1627_v22, %v1571_v20  ;;  %v667_v25 = vpop.f32.mrb[3].mxu1 }
 0x199   : > { %v738_v26 = vmul.f32 %v667_v25, %v522_v23 }
 0x19a   : > { %v1574_v27 = vpop.f32.mrb[4].mxu0 }
 0x19b   : > { %v753_v28 = vadd.f32 %v752_v21, %v738_v26  ;;  %v1630_v29 = vpop.f32.mrb[4].mxu1  ;;  %v532_v30 = vpop.f32.mrb[5].mxu0 }
 0x19c   : > { %v741_v31 = vmul.f32 %v1630_v29, %v1574_v27  ;;  %v677_v32 = vpop.f32.mrb[5].mxu1 }
 0x19d   : > { %v740_v33 = vmul.f32 %v677_v32, %v532_v30  ;;  %v754_v34 = vadd.f32 %v753_v28, %v739_v24 }
 0x19e   : > { %v1577_v35 = vpop.f32.mrb[6].mxu0 }
 0x19f   : > { %v755_v36 = vadd.f32 %v754_v34, %v740_v33  ;;  %v1633_v37 = vpop.f32.mrb[6].mxu1  ;;  %v542_v38 = vpop.f32.mrb[7].mxu0 }
 0x1a0   : > { %v743_v39 = vmul.f32 %v1633_v37, %v1577_v35  ;;  %v687_v40 = vpop.f32.mrb[7].mxu1 }
 0x1a1   : > { %v742_v41 = vmul.f32 %v687_v40, %v542_v38  ;;  %v756_v42 = vadd.f32 %v755_v36, %v741_v31 }
 0x1a2   : > { %v1580_v43 = vpop.f32.mrb[8].mxu0 }
 0x1a3   : > { %v757_v44 = vadd.f32 %v756_v42, %v742_v41  ;;  %v1636_v45 = vpop.f32.mrb[8].mxu1  ;;  %v552_v46 = vpop.f32.mrb[9].mxu0 }
 0x1a4   : > { %v745_v47 = vmul.f32 %v1636_v45, %v1580_v43  ;;  %v697_v48 = vpop.f32.mrb[9].mxu1  ;;  %v773_v43 = vld [vmem:[%s2974_s15] sm:$0x1] }
 0x1a5   : > { %v744_v49 = vmul.f32 %v697_v48, %v552_v46  ;;  %v758_v50 = vadd.f32 %v757_v44, %v743_v39 }
 0x1a6   : > { %v1583_v51 = vpop.f32.mrb[10].mxu0 }
 0x1a7   : > { %v759_v52 = vadd.f32 %v758_v50, %v744_v49  ;;  %v1639_v53 = vpop.f32.mrb[10].mxu1  ;;  %v562_v54 = vpop.f32.mrb[11].mxu0 }
 0x1a8   : > { %v747_v55 = vmul.f32 %v1639_v53, %v1583_v51  ;;  %v707_v56 = vpop.f32.mrb[11].mxu1 }
 0x1a9   : > { %v746_v57 = vmul.f32 %v707_v56, %v562_v54  ;;  %v760_v58 = vadd.f32 %v759_v52, %v745_v47 }
 0x1aa   : > { %v1586_v59 = vpop.f32.mrb[12].mxu0 }
 0x1ab   : > { %v761_v60 = vadd.f32 %v760_v58, %v746_v57  ;;  %v1642_v61 = vpop.f32.mrb[12].mxu1  ;;  %v572_v62 = vpop.f32.mrb[13].mxu0 }
 0x1ac   : > { %v749_v63 = vmul.f32 %v1642_v61, %v1586_v59  ;;  %v717_v0 = vpop.f32.mrb[13].mxu1 }
 0x1ad   : > { %v748_v1 = vmul.f32 %v717_v0, %v572_v62  ;;  %v762_v2 = vadd.f32 %v761_v60, %v747_v55 }
 0x1ae   : > { %v1589_v3 = vpop.f32.mrb[14].mxu0 }
 0x1af   : > { %v763_v4 = vadd.f32 %v762_v2, %v748_v1  ;;  %v1645_v5 = vpop.f32.mrb[14].mxu1  ;;  %v582_v6 = vpop.f32.mrb[15].mxu0 }
 0x1b0   : > { %v751_v7 = vmul.f32 %v1645_v5, %v1589_v3  ;;  %v727_v8 = vpop.f32.mrb[15].mxu1 }
 0x1b1   : > { %v750_v11 = vmul.f32 %v727_v8, %v582_v6  ;;  %v764_v12 = vadd.f32 %v763_v4, %v749_v63 }
 0x1b2   : > { %v1680_v14 = vpop.f32.mrb[16].mxu0 }
 0x1b3   : > { %v765_v15 = vadd.f32 %v764_v12, %v750_v11  ;;  %v1736_v16 = vpop.f32.mrb[16].mxu1  ;;  %v916_v9 = vpop.f32.mrb[17].mxu0 }
 0x1b4   : > { %v1141_v10 = vmul.f32 %v1736_v16, %v1680_v14  ;;  %v1061_v13 = vpop.f32.mrb[17].mxu1 }
 0x1b5   : > { %v766_v17 = vadd.f32 %v765_v15, %v751_v7  ;;  %v1140_v18 = vmul.f32 %v1061_v13, %v916_v9 }
 0x1b6   : > { %v1683_v19 = vpop.f32.mrb[18].mxu0 }
 0x1b7   : > { %v767_v20 = vrot.slane %v766_v17, 4  ;;  %v1156_v21 = vadd.f32 %v1141_v10, %v1140_v18  ;;  %v1739_v22 = vpop.f32.mrb[18].mxu1  ;;  %v926_v23 = vpop.f32.mrb[19].mxu0 }
 0x1b8   : > { %v1143_v24 = vmul.f32 %v1739_v22, %v1683_v19  ;;  %v1071_v25 = vpop.f32.mrb[19].mxu1 }
 0x1b9   : > { %v768_v26 = vadd.f32 %v767_v20, %v766_v17  ;;  %v1142_v27 = vmul.f32 %v1071_v25, %v926_v23  ;;  %v1177_v25 = vld [vmem:[%s2974_s15 + $0x1] sm:$0x1] }
 0x1ba   : > { %v1686_v28 = vpop.f32.mrb[20].mxu0 }
 0x1bb   : > { %v769_v29 = vrot.slane %v768_v26, 2  ;;  %v1157_v30 = vadd.f32 %v1156_v21, %v1142_v27  ;;  %v1742_v31 = vpop.f32.mrb[20].mxu1  ;;  %v936_v32 = vpop.f32.mrb[21].mxu0 }
 0x1bc   : > { %v1145_v33 = vmul.f32 %v1742_v31, %v1686_v28  ;;  %v1081_v34 = vpop.f32.mrb[21].mxu1 }
 0x1bd   : > { %v770_v35 = vadd.f32 %v769_v29, %v768_v26  ;;  %v1144_v36 = vmul.f32 %v1081_v34, %v936_v32  ;;  %v1158_v37 = vadd.f32 %v1157_v30, %v1143_v24 }
 0x1be   : > { %v1689_v38 = vpop.f32.mrb[22].mxu0 }
 0x1bf   : > { %v771_v39 = vrot.slane %v770_v35, 1  ;;  %v1159_v40 = vadd.f32 %v1158_v37, %v1144_v36  ;;  %v1745_v41 = vpop.f32.mrb[22].mxu1  ;;  %v946_v42 = vpop.f32.mrb[23].mxu0 }
 0x1c0   : > { %v1147_v44 = vmul.f32 %v1745_v41, %v1689_v38  ;;  %v1091_v45 = vpop.f32.mrb[23].mxu1 }
 0x1c1   : > { %v772_v46 = vadd.f32 %v771_v39, %v770_v35  ;;  %v1146_v47 = vmul.f32 %v1091_v45, %v946_v42  ;;  %v1160_v48 = vadd.f32 %v1159_v40, %v1145_v33 }
 0x1c2   : > { %v1692_v49 = vpop.f32.mrb[24].mxu0 }
 0x1c3   : > { %v774_v50 = vadd.f32 %v773_v43, %v772_v46  ;;  %v1161_v51 = vadd.f32 %v1160_v48, %v1146_v47  ;;  %v1748_v52 = vpop.f32.mrb[24].mxu1  ;;  %v956_v53 = vpop.f32.mrb[25].mxu0 }
 0x1c4   : > { %v1149_v54 = vmul.f32 %v1748_v52, %v1692_v49  ;;  %v1101_v55 = vpop.f32.mrb[25].mxu1 }
 0x1c5   : > { %v1148_v56 = vmul.f32 %v1101_v55, %v956_v53  ;;  %v1162_v57 = vadd.f32 %v1161_v51, %v1147_v44  ;;  %775 = vst [vmem:[%s2978_s12] sm:$0x1] %v774_v50 }
 0x1c6   : > { %v1695_v58 = vpop.f32.mrb[26].mxu0 }
 0x1c7   : > { %v1163_v59 = vadd.f32 %v1162_v57, %v1148_v56  ;;  %v1751_v60 = vpop.f32.mrb[26].mxu1  ;;  %v966_v61 = vpop.f32.mrb[27].mxu0 }
 0x1c8   : > { %v1151_v62 = vmul.f32 %v1751_v60, %v1695_v58  ;;  %v1111_v63 = vpop.f32.mrb[27].mxu1 }
 0x1c9   : > { %v1150_v0 = vmul.f32 %v1111_v63, %v966_v61  ;;  %v1164_v1 = vadd.f32 %v1163_v59, %v1149_v54 }
 0x1ca   : > { %v1698_v2 = vpop.f32.mrb[28].mxu0 }
 0x1cb   : > { %v1165_v3 = vadd.f32 %v1164_v1, %v1150_v0  ;;  %v1754_v4 = vpop.f32.mrb[28].mxu1  ;;  %v976_v5 = vpop.f32.mrb[29].mxu0 }
 0x1cc   : > { %v1153_v6 = vmul.f32 %v1754_v4, %v1698_v2  ;;  %v1121_v7 = vpop.f32.mrb[29].mxu1 }
 0x1cd   : > { %v1152_v8 = vmul.f32 %v1121_v7, %v976_v5  ;;  %v1166_v11 = vadd.f32 %v1165_v3, %v1151_v62 }
 0x1ce   : > { %v1701_v12 = vpop.f32.mrb[30].mxu0 }
 0x1cf   : > { %v1167_v14 = vadd.f32 %v1166_v11, %v1152_v8  ;;  %v1757_v15 = vpop.f32.mrb[30].mxu1  ;;  %v986_v16 = vpop.f32.mrb[31].mxu0 }
 0x1d0   : > { %v1155_v9 = vmul.f32 %v1757_v15, %v1701_v12  ;;  %v1131_v10 = vpop.f32.mrb[31].mxu1 }
 0x1d1   : > { %v1154_v13 = vmul.f32 %v1131_v10, %v986_v16  ;;  %v1168_v17 = vadd.f32 %v1167_v14, %v1153_v6 }
 0x1d3   : > { %v1169_v18 = vadd.f32 %v1168_v17, %v1154_v13 }
 0x1d5   : > { %v1170_v19 = vadd.f32 %v1169_v18, %v1155_v9 }
 0x1d7   : > { %v1171_v20 = vrot.slane %v1170_v19, 4 }
 0x1d9   : > { %v1172_v21 = vadd.f32 %v1171_v20, %v1170_v19 }
 0x1db   : > { %v1173_v22 = vrot.slane %v1172_v21, 2 }
 0x1dd   : > { %v1174_v23 = vadd.f32 %v1173_v22, %v1172_v21 }
 0x1df   : > { %v1175_v24 = vrot.slane %v1174_v23, 1 }
 0x1e1   : > { %v1176_v26 = vadd.f32 %v1175_v24, %v1174_v23 }
 0x1e3   : > { %v1178_v27 = vadd.f32 %v1177_v25, %v1176_v26 }
 0x1e5   : > { %1179 = vst [vmem:[%s2978_s12 + $0x1] sm:$0x1] %v1178_v27 }
 0x1e6   : > { %2090 = shalt.err (!%p2087_p1)
}
 0x1e7   : > { %s2091_s17 = scalar_lea.hbm %s2987_s29, 32  ;;  %s2095_s24 = scalar_lea.hbm %s3037_s5, 64 }
 0x1e8   : > { %p2092_p8 = scmp.ne.s32.totalorder %s2987_s29, %s2091_s17  ;;  %p2096_p9 = scmp.lt.u32.totalorder %s2987_s29, %s3037_s5 }
 0x1e9   : > { %p2097_p12 = scmp.lt.u32.totalorder %s2095_s24, %s2091_s17  ;;  %p2099_p13 = scmp.lt.u32.totalorder %s2091_s17, %s2987_s29 }
 0x1ea   : > { %p2093_p11 = pnand %p2092_p8, %p3107_p6 }
 0x1eb   : > { %p2098_p2 = por %p2097_p12, %p2096_p9 }
 0x1ec   : > { %p2094_p0 = pneg %p2093_p11 }
 0x1ed   : > { %p2100_p10 = por %p2099_p13, %p2098_p2 }
 0x1ef   : > { %p2101_p4 = pnand %p2100_p10, %p2094_p0 }
 0x1f1   : > { %2104 = shalt.err (!%p2101_p4)
}
 0x1f2   : > { %1898 = dma.vmem_to_hbm [thread:$0]  (%p3107_p6), %s2989_s6, 32, %s2987_s29, %s1181_s3  }
 0x1f3 PF: > { %s1206_s30 = sand.u32 1, %s2143_s18   ;;  %p3108_p5 = scmp.ne.s32.totalorder %s3045_s25, 0 }
 0x1f4   : > { %p3109_p3 = scmp.ge.s32.totalorder %s2155_s21, 2  ;;  %s1207_s15 = scalar_lea.sflag [#allocation4], %s1206_s30 }
 0x1f6   : > { %p1915_p7 = pnand %p3109_p3, %p3108_p5 }
 0x1f8   : > { %2138 = dma.done.wait (!%p1915_p7), %s1207_s15, 32  }
 0x1f9   : > { %2140 = vsyncadd (!%p1915_p7), %s1207_s15, 4294967264  ;;  %p22_p1 = scmp.ge.s32.totalorder %s2305_s14, 4   ;;  %s3110_s18 = smov %s2147_s19 }
 0x1fa   : > { %s3111_s19 = smov %s2151_s20  ;;  %s3112_s20 = smov %s2321_s27 }
 0x1fb   : > { %s3113_s21 = smov %s2305_s14  ;;  %24 = sbr.rel (!%p22_p1) target bundleno = 11 (0xb), region = 109 }
 0x202   :  { %1212 = vsyncpa [#allocation3], 1 }
 0x203   :  { %1214 = vsyncpa [#allocation3 + $0x1], 1 }
 0x204   :  { %1215 = vsyncpa [#allocation6], 1 }
 0x205   :  { %1217 = vsyncpa [#allocation6 + $0x1], 1 }
 0x206   :  { %1218 = vsyncpa [#allocation9], 1 }
 0x207   :  { %1219 = vsyncpa [#allocation4], 1 }
 0x208   :  { %1221 = vsyncpa [#allocation4 + $0x1], 1 }

</bundles_post_ra>
